<compile_context>
chip_gen: v5e
topology: v5e:2x2
jax: 0.10.0
libtpu: 0.0.40
codegen_flags: <defaults>
</compile_context>

<pallas_src>
import math

import jax
import jax.numpy as jnp
from jax.experimental import pallas as pl
from jax.experimental.pallas import tpu as pltpu

EPS = 1e-5


# ----------------------------- in-kernel helpers ----------------------------


def _conv3x3_fused(a, bmat_ref, bias_ref):
    """3x3 'same' conv on a channel-packed block as ONE MXU matmul.

    a:        (Nb, H, WC) f32 activations (lane axis = W*C_pad, multiple of 128)
    bmat_ref: (3*WC, WC) bf16 banded weights; the three ky taps are stacked on
              the K axis, the dx taps + channel contraction are folded into the
              band structure (zero padding along W is implicit).
    bias_ref: (1, WC) f32 channel bias tiled along W.
    returns   (Nb, H, WC) f32
    """
    Nb, H, WC = a.shape
    zrow = jnp.zeros((Nb, 1, WC), a.dtype)
    # H halo: one pad-concat (rows 0 / H+1 are the zero padding along H).
    a_pad = jnp.concatenate([zrow, a, zrow], axis=1)            # (Nb, H+2, WC)
    # ky taps fused onto the lane/K axis: [in(h-1) | in(h) | in(h+1)].
    x_cat = jnp.concatenate(
        [a_pad[:, 0:H, :], a, a_pad[:, 2:H + 2, :]], axis=2)    # (Nb, H, 3*WC)
    x2d = x_cat.reshape(Nb * H, 3 * WC).astype(jnp.bfloat16)    # bf16 MXU operand
    z = jnp.dot(x2d, bmat_ref[...], preferred_element_type=jnp.float32)
    return (z + bias_ref[...]).reshape(Nb, H, WC)


def _moments(z):
    # Per-block, per-(w,c) lane sums and sums-of-squares over all rows -> (2, WC).
    z2d = z.reshape(-1, z.shape[-1])
    return jnp.concatenate(
        [jnp.sum(z2d, axis=0, keepdims=True),
         jnp.sum(z2d * z2d, axis=0, keepdims=True)], axis=0)


# ----------------------------- kernels --------------------------------------


def conv1_kernel(x_ref, bmat_ref, bias_ref, z_ref, psum_ref):
    z = _conv3x3_fused(x_ref[...], bmat_ref, bias_ref)
    z_ref[...] = z
    psum_ref[0] = _moments(z)


def bn_relu_conv2_kernel(z1_ref, scale_ref, shift_ref, bmat_ref, bias_ref,
                         z2_ref, psum_ref):
    # BN1 + ReLU in f32 (scale/shift precomputed per channel in the wrapper).
    a = jnp.maximum(z1_ref[...] * scale_ref[...] + shift_ref[...], 0.0)
    z2 = _conv3x3_fused(a, bmat_ref, bias_ref)
    z2_ref[...] = z2
    psum_ref[0] = _moments(z2)


def bn_residual_relu_kernel(z2_ref, x_ref, scale_ref, shift_ref, out_ref):
    out_ref[...] = jnp.maximum(
        x_ref[...] + z2_ref[...] * scale_ref[...] + shift_ref[...], 0.0)


# ------------------------- wrapper-side helpers -----------------------------


def _pad_channels(C, W):
    """Smallest C_pad >= C such that W*C_pad is a multiple of 128 (lane-dense)."""
    m = 128 // math.gcd(W, 128)
    return ((C + m - 1) // m) * m


def _pick_batch_block(N, H, rows_target=256):
    """Images per grid step: target >=rows_target matmul-M rows, divisor of N."""
    nb = max(1, min(N, max(1, rows_target // max(H, 1))))
    while N % nb:
        nb -= 1
    return nb


def _vmem_limit_bytes():
    # v5e/v6e: 128 MiB physical -> 96 MiB scoped; v7x: 64 MiB -> 48 MiB.
    cap = None
    try:
        cap = getattr(pltpu.get_tpu_info(), "vmem_capacity_bytes", None)
    except Exception:
        cap = None
    if cap is None:
        cap = 64 * 1024 * 1024          # conservative (v7x-sized) fallback
    return min(96 * 1024 * 1024, (cap * 3) // 4)


def _stacked_band_matrix(w_hwio, W, C_pad):
    """Fold dx taps + channel contraction into banded matrices, stack the three
    ky taps along K -> (3*W*C_pad, W*C_pad) bf16.  Pad channels are zero."""
    C = w_hwio.shape[-1]
    w = jnp.zeros((3, 3, C_pad, C_pad), jnp.float32)
    w = w.at[:, :, :C, :C].set(w_hwio.astype(jnp.float32))
    idx = jnp.arange(W)
    mats = []
    for ky in range(3):
        m = jnp.zeros((W * C_pad, W * C_pad), jnp.float32)
        for kx in range(3):
            # S[w_src, w_dst] = 1 iff w_src == w_dst + (kx - 1); zero pad along
            # W is implicit in the band structure.
            shift = (idx[:, None] == idx[None, :] + (kx - 1)).astype(jnp.float32)
            m = m + jnp.kron(shift, w[ky, kx])
        mats.append(m)
    return jnp.concatenate(mats, axis=0).astype(jnp.bfloat16)   # (3*WC, WC)


def _tile_channels(v, W, C_pad):
    """Per-channel (C,) vector -> (1, W*C_pad); pad channels get zeros."""
    v = v.reshape(-1)
    v_p = jnp.zeros((C_pad,), jnp.float32).at[:v.shape[0]].set(v)
    return jnp.tile(v_p, W).reshape(1, -1)


def _scale_shift(psum, gamma, beta, N, H, W, C, C_pad):
    """Training-mode BN (biased variance, eps=1e-5) from single-pass moments.
    Pad channels get scale=shift=0 so their lanes stay exactly zero."""
    cnt = N * H * W
    s = jnp.sum(psum[:, 0, :], axis=0).reshape(W, C_pad)[:, :C].sum(axis=0)
    ss = jnp.sum(psum[:, 1, :], axis=0).reshape(W, C_pad)[:, :C].sum(axis=0)
    mean = s / cnt
    var = jnp.maximum(ss / cnt - mean * mean, 0.0)
    scale = gamma.reshape(-1) * jax.lax.rsqrt(var + EPS)
    shift = beta.reshape(-1) - mean * scale
    return _tile_channels(scale, W, C_pad), _tile_channels(shift, W, C_pad)


# ----------------------------- pallas calls ---------------------------------


def _run_conv1(x_pk, bmat, bias_t, N, H, WC, Nb, vmem):
    G = N // Nb
    return pl.pallas_call(
        conv1_kernel,
        grid=(G,),
        in_specs=[
            pl.BlockSpec((Nb, H, WC), lambda g: (g, 0, 0)),       # x block
            pl.BlockSpec((3 * WC, WC), lambda g: (0, 0)),         # banded weights (bf16)
            pl.BlockSpec((1, WC), lambda g: (0, 0)),              # bias tile
        ],
        out_specs=[
            pl.BlockSpec((Nb, H, WC), lambda g: (g, 0, 0)),       # z1
            pl.BlockSpec((1, 2, WC), lambda g: (g, 0, 0)),        # per-block moments
        ],
        out_shape=[jax.ShapeDtypeStruct((N, H, WC), jnp.float32),
                   jax.ShapeDtypeStruct((G, 2, WC), jnp.float32)],
        compiler_params=pltpu.CompilerParams(
            dimension_semantics=("parallel",),
            vmem_limit_bytes=vmem),
        cost_estimate=pl.CostEstimate(
            flops=2 * N * H * 3 * WC * WC,
            transcendentals=0,
            bytes_accessed=4 * 2 * N * H * WC + 2 * 3 * WC * WC + 4 * G * 2 * WC),
    )(x_pk, bmat, bias_t)


def _run_conv2(z1, scale1, shift1, bmat, bias_t, N, H, WC, Nb, vmem):
    G = N // Nb
    return pl.pallas_call(
        bn_relu_conv2_kernel,
        grid=(G,),
        in_specs=[
            pl.BlockSpec((Nb, H, WC), lambda g: (g, 0, 0)),       # z1 block
            pl.BlockSpec((1, WC), lambda g: (0, 0)),              # BN1 scale tile
            pl.BlockSpec((1, WC), lambda g: (0, 0)),              # BN1 shift tile
            pl.BlockSpec((3 * WC, WC), lambda g: (0, 0)),         # banded weights (bf16)
            pl.BlockSpec((1, WC), lambda g: (0, 0)),              # bias tile
        ],
        out_specs=[
            pl.BlockSpec((Nb, H, WC), lambda g: (g, 0, 0)),       # z2
            pl.BlockSpec((1, 2, WC), lambda g: (g, 0, 0)),        # per-block moments
        ],
        out_shape=[jax.ShapeDtypeStruct((N, H, WC), jnp.float32),
                   jax.ShapeDtypeStruct((G, 2, WC), jnp.float32)],
        compiler_params=pltpu.CompilerParams(
            dimension_semantics=("parallel",),
            vmem_limit_bytes=vmem),
        cost_estimate=pl.CostEstimate(
            flops=2 * N * H * 3 * WC * WC + 3 * N * H * WC,
            transcendentals=0,
            bytes_accessed=4 * 2 * N * H * WC + 2 * 3 * WC * WC + 4 * G * 2 * WC),
    )(z1, scale1, shift1, bmat, bias_t)


def _run_finalize(z2, x_pk, scale2, shift2, N, H, WC, Nb, vmem):
    G = N // Nb
    return pl.pallas_call(
        bn_residual_relu_kernel,
        grid=(G,),
        in_specs=[
            pl.BlockSpec((Nb, H, WC), lambda g: (g, 0, 0)),       # z2 (aliased to out)
            pl.BlockSpec((Nb, H, WC), lambda g: (g, 0, 0)),       # residual x
            pl.BlockSpec((1, WC), lambda g: (0, 0)),              # BN2 scale tile
            pl.BlockSpec((1, WC), lambda g: (0, 0)),              # BN2 shift tile
        ],
        out_specs=pl.BlockSpec((Nb, H, WC), lambda g: (g, 0, 0)),
        out_shape=jax.ShapeDtypeStruct((N, H, WC), jnp.float32),
        input_output_aliases={0: 0},                              # z2 buffer reused
        compiler_params=pltpu.CompilerParams(
            dimension_semantics=("parallel",),
            vmem_limit_bytes=vmem),
        cost_estimate=pl.CostEstimate(
            flops=4 * N * H * WC,
            transcendentals=0,
            bytes_accessed=4 * 3 * N * H * WC),
    )(z2, x_pk, scale2, shift2)


# ------------------------------- module -------------------------------------


def residual_block(x_nchw, params):
    """x_nchw: (N, C, H, W) float32 -> (N, C, H, W) float32 (training-mode BN)."""
    w1, b1, g1, be1, w2, b2, g2, be2 = params
    N, C, H, W = x_nchw.shape
    C_pad = _pad_channels(C, W)
    WC = W * C_pad

    # One layout change in, one out (lane-dense channel-packed layout).
    # TODO(synk): keep activations packed across consecutive residual blocks so
    # these transposes happen once per network, not once per block.
    x_nhwc = jnp.transpose(x_nchw, (0, 2, 3, 1))
    if C_pad != C:
        x_nhwc = jnp.pad(x_nhwc, ((0, 0), (0, 0), (0, 0), (0, C_pad - C)))
    x_pk = x_nhwc.reshape(N, H, WC)

    bmat1 = _stacked_band_matrix(w1, W, C_pad)
    bmat2 = _stacked_band_matrix(w2, W, C_pad)
    bias1 = _tile_channels(b1, W, C_pad)
    bias2 = _tile_channels(b2, W, C_pad)

    Nb = _pick_batch_block(N, H)
    vmem = _vmem_limit_bytes()

    # pass 1: conv1 + single-pass moments
    z1, psum1 = _run_conv1(x_pk, bmat1, bias1, N, H, WC, Nb, vmem)
    scale1, shift1 = _scale_shift(psum1, g1, be1, N, H, W, C, C_pad)

    # pass 2: BN1 + ReLU + conv2 + moments
    z2, psum2 = _run_conv2(z1, scale1, shift1, bmat2, bias2, N, H, WC, Nb, vmem)
    scale2, shift2 = _scale_shift(psum2, g2, be2, N, H, W, C, C_pad)

    # pass 3: BN2 + residual + ReLU (elementwise, z2 buffer aliased to output)
    out_pk = _run_finalize(z2, x_pk, scale2, shift2, N, H, WC, Nb, vmem)

    out = out_pk.reshape(N, H, W, C_pad)[..., :C]
    return jnp.transpose(out, (0, 3, 1, 2))


# ------------------------------ reference -----------------------------------


def reference(x_nchw, params):
    """Pure-JAX f32 reference (training-mode BN), for correctness checking."""
    w1, b1, g1, be1, w2, b2, g2, be2 = params
    x = jnp.transpose(x_nchw, (0, 2, 3, 1))

    def conv(a, w, b):
        y = jax.lax.conv_general_dilated(
            a, w, window_strides=(1, 1), padding="SAME",
            dimension_numbers=("NHWC", "HWIO", "NHWC"))
        return y + b.reshape(1, 1, 1, -1)

    def bn(z, g, be):
        mean = jnp.mean(z, axis=(0, 1, 2), keepdims=True)
        var = jnp.mean((z - mean) ** 2, axis=(0, 1, 2), keepdims=True)
        return ((z - mean) * jax.lax.rsqrt(var + EPS)
                * g.reshape(1, 1, 1, -1) + be.reshape(1, 1, 1, -1))

    a1 = jnp.maximum(bn(conv(x, w1, b1), g1, be1), 0.0)
    a2 = bn(conv(a1, w2, b2), g2, be2)
    out = jnp.maximum(x + a2, 0.0)
    return jnp.transpose(out, (0, 3, 1, 2))


def init_params(key, C):
    ks = jax.random.split(key, 8)
    w1 = 0.1 * jax.random.normal(ks[0], (3, 3, C, C), jnp.float32)   # HWIO
    b1 = 0.1 * jax.random.normal(ks[1], (1, C), jnp.float32)
    g1 = 1.0 + 0.1 * jax.random.normal(ks[2], (1, C), jnp.float32)
    be1 = 0.1 * jax.random.normal(ks[3], (1, C), jnp.float32)
    w2 = 0.1 * jax.random.normal(ks[4], (3, 3, C, C), jnp.float32)
    b2 = 0.1 * jax.random.normal(ks[5], (1, C), jnp.float32)
    g2 = 1.0 + 0.1 * jax.random.normal(ks[6], (1, C), jnp.float32)
    be2 = 0.1 * jax.random.normal(ks[7], (1, C), jnp.float32)
    return (w1, b1, g1, be1, w2, b2, g2, be2)


if __name__ == "__main__":
    N, C, H, W = 2, 4, 16, 16
    key = jax.random.PRNGKey(0)
    kx, kp = jax.random.split(key)
    x = jax.random.normal(kx, (N, C, H, W), jnp.float32)
    params = init_params(kp, C)

    out = jax.block_until_ready(jax.jit(residual_block)(x, params))
    ref = jax.block_until_ready(reference(x, params))

    assert out.shape == (N, C, H, W)
    max_err = float(jnp.max(jnp.abs(out - ref)))
    # bf16 MXU operands (f32 accumulate) widen the tolerance vs the f32 reference.
    assert max_err < 2e-2, f"mismatch vs reference: {max_err}"
    print("KERNEL_OK")
</pallas_src>

<mosaic_0001>
module attributes {stable_mosaic.version = 11 : i64} {
  func.func @conv1_kernel(%arg0: i32, %arg1: memref<2x16x128xf32, #tpu.memory_space<vmem>>, %arg2: memref<384x128xbf16, #tpu.memory_space<vmem>>, %arg3: memref<1x128xf32, #tpu.memory_space<vmem>>, %arg4: memref<2x16x128xf32, #tpu.memory_space<vmem>>, %arg5: memref<1x2x128xf32, #tpu.memory_space<vmem>>) attributes {dimension_semantics = [#tpu.dimension_semantics<parallel>], iteration_bounds = array<i64: 1>, scalar_prefetch = 0 : i64, scratch_operands = 0 : i64, tpu.core_type = #tpu.core_type<tc>, window_params = [{transform_indices = @transform_0, window_bounds = array<i64: 2, 16, 128>}, {pipeline_mode = #tpu.pipeline_mode<synchronous>, transform_indices = @transform_1, window_bounds = array<i64: 384, 128>}, {pipeline_mode = #tpu.pipeline_mode<synchronous>, transform_indices = @transform_2, window_bounds = array<i64: 1, 128>}, {transform_indices = @transform_3, window_bounds = array<i64: 2, 16, 128>}, {transform_indices = @transform_4, window_bounds = array<i64: 1, 2, 128>}]} {
    %c0 = arith.constant 0 : index
    %c0_0 = arith.constant 0 : index
    %c0_1 = arith.constant 0 : index
    %0 = vector.load %arg1[%c0, %c0_0, %c0_1] : memref<2x16x128xf32, #tpu.memory_space<vmem>>, vector<2x16x128xf32>
    %cst = arith.constant 0.000000e+00 : f32
    %1 = vector.broadcast %cst : f32 to vector<2x1x128xf32>
    %2 = tpu.concatenate %1, %0, %1 in 1 : vector<2x1x128xf32>, vector<2x16x128xf32>, vector<2x1x128xf32> -> vector<2x18x128xf32>
    %3 = vector.extract_strided_slice %2 {offsets = [0, 0, 0], sizes = [2, 16, 128], strides = [1, 1, 1]} : vector<2x18x128xf32> to vector<2x16x128xf32>
    %4 = vector.extract_strided_slice %2 {offsets = [0, 2, 0], sizes = [2, 16, 128], strides = [1, 1, 1]} : vector<2x18x128xf32> to vector<2x16x128xf32>
    %5 = tpu.concatenate %3, %0, %4 in 2 : vector<2x16x128xf32>, vector<2x16x128xf32>, vector<2x16x128xf32> -> vector<2x16x384xf32>
    %6 = vector.shape_cast %5 : vector<2x16x384xf32> to vector<32x384xf32>
    %7 = arith.truncf %6 : vector<32x384xf32> to vector<32x384xbf16>
    %c0_2 = arith.constant 0 : index
    %c0_3 = arith.constant 0 : index
    %8 = vector.load %arg2[%c0_2, %c0_3] : memref<384x128xbf16, #tpu.memory_space<vmem>>, vector<384x128xbf16>
    %cst_4 = arith.constant dense<0.000000e+00> : vector<32x128xf32>
    %9 = tpu.matmul %7, %8, %cst_4 {dimension_numbers = #tpu.dot_dimension_numbers<[1], [0], [0], [1], [0, 0, 1, 1], [], []>} : vector<32x384xbf16>, vector<384x128xbf16>, vector<32x128xf32> -> vector<32x128xf32>
    %c0_5 = arith.constant 0 : index
    %c0_6 = arith.constant 0 : index
    %10 = vector.load %arg3[%c0_5, %c0_6] : memref<1x128xf32, #tpu.memory_space<vmem>>, vector<1x128xf32>
    %11 = vector.broadcast %10 : vector<1x128xf32> to vector<32x128xf32>
    %12 = arith.addf %9, %11 : vector<32x128xf32>
    %13 = vector.shape_cast %12 : vector<32x128xf32> to vector<2x16x128xf32>
    %c0_7 = arith.constant 0 : index
    %c0_8 = arith.constant 0 : index
    %c0_9 = arith.constant 0 : index
    %14 = vector.load %arg4[%c0_7, %c0_8, %c0_9] : memref<2x16x128xf32, #tpu.memory_space<vmem>>, vector<2x16x128xf32>
    tpu.vector_store %arg4[%c0_7, %c0_8, %c0_9], %13 {strides = array<i32>} : memref<2x16x128xf32, #tpu.memory_space<vmem>>, vector<2x16x128xf32>,
    %15 = vector.shape_cast %13 : vector<2x16x128xf32> to vector<32x128xf32>
    %cst_10 = arith.constant dense<0.000000e+00> : vector<128xf32>
    %16 = vector.multi_reduction <add>, %15, %cst_10 [0] : vector<32x128xf32> to vector<128xf32>
    %17 = vector.shape_cast %16 : vector<128xf32> to vector<1x128xf32>
    %18 = arith.mulf %15, %15 : vector<32x128xf32>
    %cst_11 = arith.constant dense<0.000000e+00> : vector<128xf32>
    %19 = vector.multi_reduction <add>, %18, %cst_11 [0] : vector<32x128xf32> to vector<128xf32>
    %20 = vector.shape_cast %19 : vector<128xf32> to vector<1x128xf32>
    %21 = tpu.concatenate %17, %20 in 0 : vector<1x128xf32>, vector<1x128xf32> -> vector<2x128xf32>
    %c0_12 = arith.constant 0 : index
    %c0_13 = arith.constant 0 : index
    %c0_14 = arith.constant 0 : index
    %22 = vector.load %arg5[%c0_12, %c0_13, %c0_14] : memref<1x2x128xf32, #tpu.memory_space<vmem>>, vector<1x2x128xf32>
    %23 = vector.shape_cast %22 : vector<1x2x128xf32> to vector<2x128xf32>
    %24 = vector.shape_cast %21 : vector<2x128xf32> to vector<1x2x128xf32>
    tpu.vector_store %arg5[%c0_12, %c0_13, %c0_14], %24 {strides = array<i32>} : memref<1x2x128xf32, #tpu.memory_space<vmem>>, vector<1x2x128xf32>,
    return
  }
  func.func @transform_0(%arg0: i32) -> (i32, i32, i32) {
    %c0_i32 = arith.constant 0 : i32
    %c0_i32_0 = arith.constant 0 : i32
    %c0_i32_1 = arith.constant 0 : i32
    return %arg0, %c0_i32, %c0_i32_0 : i32, i32, i32
  }
  func.func @transform_1(%arg0: i32) -> (i32, i32) {
    %c0_i32 = arith.constant 0 : i32
    %c0_i32_0 = arith.constant 0 : i32
    %c0_i32_1 = arith.constant 0 : i32
    return %c0_i32, %c0_i32_0 : i32, i32
  }
  func.func @transform_2(%arg0: i32) -> (i32, i32) {
    %c0_i32 = arith.constant 0 : i32
    %c0_i32_0 = arith.constant 0 : i32
    %c0_i32_1 = arith.constant 0 : i32
    return %c0_i32, %c0_i32_0 : i32, i32
  }
  func.func @transform_3(%arg0: i32) -> (i32, i32, i32) {
    %c0_i32 = arith.constant 0 : i32
    %c0_i32_0 = arith.constant 0 : i32
    %c0_i32_1 = arith.constant 0 : i32
    return %arg0, %c0_i32, %c0_i32_0 : i32, i32, i32
  }
  func.func @transform_4(%arg0: i32) -> (i32, i32, i32) {
    %c0_i32 = arith.constant 0 : i32
    %c0_i32_0 = arith.constant 0 : i32
    %c0_i32_1 = arith.constant 0 : i32
    return %arg0, %c0_i32, %c0_i32_0 : i32, i32, i32
  }
}

module attributes {stable_mosaic.version = 11 : i64} {
  func.func @bn_relu_conv2_kernel(%arg0: i32, %arg1: memref<2x16x128xf32, #tpu.memory_space<vmem>>, %arg2: memref<1x128xf32, #tpu.memory_space<vmem>>, %arg3: memref<1x128xf32, #tpu.memory_space<vmem>>, %arg4: memref<384x128xbf16, #tpu.memory_space<vmem>>, %arg5: memref<1x128xf32, #tpu.memory_space<vmem>>, %arg6: memref<2x16x128xf32, #tpu.memory_space<vmem>>, %arg7: memref<1x2x128xf32, #tpu.memory_space<vmem>>) attributes {dimension_semantics = [#tpu.dimension_semantics<parallel>], iteration_bounds = array<i64: 1>, scalar_prefetch = 0 : i64, scratch_operands = 0 : i64, tpu.core_type = #tpu.core_type<tc>, window_params = [{transform_indices = @transform_0, window_bounds = array<i64: 2, 16, 128>}, {pipeline_mode = #tpu.pipeline_mode<synchronous>, transform_indices = @transform_1, window_bounds = array<i64: 1, 128>}, {pipeline_mode = #tpu.pipeline_mode<synchronous>, transform_indices = @transform_2, window_bounds = array<i64: 1, 128>}, {pipeline_mode = #tpu.pipeline_mode<synchronous>, transform_indices = @transform_3, window_bounds = array<i64: 384, 128>}, {pipeline_mode = #tpu.pipeline_mode<synchronous>, transform_indices = @transform_4, window_bounds = array<i64: 1, 128>}, {transform_indices = @transform_5, window_bounds = array<i64: 2, 16, 128>}, {transform_indices = @transform_6, window_bounds = array<i64: 1, 2, 128>}]} {
    %c0 = arith.constant 0 : index
    %c0_0 = arith.constant 0 : index
    %c0_1 = arith.constant 0 : index
    %0 = vector.load %arg1[%c0, %c0_0, %c0_1] : memref<2x16x128xf32, #tpu.memory_space<vmem>>, vector<2x16x128xf32>
    %c0_2 = arith.constant 0 : index
    %c0_3 = arith.constant 0 : index
    %1 = vector.load %arg2[%c0_2, %c0_3] : memref<1x128xf32, #tpu.memory_space<vmem>>, vector<1x128xf32>
    %2 = vector.shape_cast %1 : vector<1x128xf32> to vector<1x1x128xf32>
    %3 = vector.broadcast %2 : vector<1x1x128xf32> to vector<2x16x128xf32>
    %4 = arith.mulf %0, %3 : vector<2x16x128xf32>
    %c0_4 = arith.constant 0 : index
    %c0_5 = arith.constant 0 : index
    %5 = vector.load %arg3[%c0_4, %c0_5] : memref<1x128xf32, #tpu.memory_space<vmem>>, vector<1x128xf32>
    %6 = vector.shape_cast %5 : vector<1x128xf32> to vector<1x1x128xf32>
    %7 = vector.broadcast %6 : vector<1x1x128xf32> to vector<2x16x128xf32>
    %8 = arith.addf %4, %7 : vector<2x16x128xf32>
    %cst = arith.constant 0.000000e+00 : f32
    %9 = vector.broadcast %cst : f32 to vector<2x16x128xf32>
    %10 = arith.maximumf %8, %9 : vector<2x16x128xf32>
    %cst_6 = arith.constant 0.000000e+00 : f32
    %11 = vector.broadcast %cst_6 : f32 to vector<2x1x128xf32>
    %12 = tpu.concatenate %11, %10, %11 in 1 : vector<2x1x128xf32>, vector<2x16x128xf32>, vector<2x1x128xf32> -> vector<2x18x128xf32>
    %13 = vector.extract_strided_slice %12 {offsets = [0, 0, 0], sizes = [2, 16, 128], strides = [1, 1, 1]} : vector<2x18x128xf32> to vector<2x16x128xf32>
    %14 = vector.extract_strided_slice %12 {offsets = [0, 2, 0], sizes = [2, 16, 128], strides = [1, 1, 1]} : vector<2x18x128xf32> to vector<2x16x128xf32>
    %15 = tpu.concatenate %13, %10, %14 in 2 : vector<2x16x128xf32>, vector<2x16x128xf32>, vector<2x16x128xf32> -> vector<2x16x384xf32>
    %16 = vector.shape_cast %15 : vector<2x16x384xf32> to vector<32x384xf32>
    %17 = arith.truncf %16 : vector<32x384xf32> to vector<32x384xbf16>
    %c0_7 = arith.constant 0 : index
    %c0_8 = arith.constant 0 : index
    %18 = vector.load %arg4[%c0_7, %c0_8] : memref<384x128xbf16, #tpu.memory_space<vmem>>, vector<384x128xbf16>
    %cst_9 = arith.constant dense<0.000000e+00> : vector<32x128xf32>
    %19 = tpu.matmul %17, %18, %cst_9 {dimension_numbers = #tpu.dot_dimension_numbers<[1], [0], [0], [1], [0, 0, 1, 1], [], []>} : vector<32x384xbf16>, vector<384x128xbf16>, vector<32x128xf32> -> vector<32x128xf32>
    %c0_10 = arith.constant 0 : index
    %c0_11 = arith.constant 0 : index
    %20 = vector.load %arg5[%c0_10, %c0_11] : memref<1x128xf32, #tpu.memory_space<vmem>>, vector<1x128xf32>
    %21 = vector.broadcast %20 : vector<1x128xf32> to vector<32x128xf32>
    %22 = arith.addf %19, %21 : vector<32x128xf32>
    %23 = vector.shape_cast %22 : vector<32x128xf32> to vector<2x16x128xf32>
    %c0_12 = arith.constant 0 : index
    %c0_13 = arith.constant 0 : index
    %c0_14 = arith.constant 0 : index
    %24 = vector.load %arg6[%c0_12, %c0_13, %c0_14] : memref<2x16x128xf32, #tpu.memory_space<vmem>>, vector<2x16x128xf32>
    tpu.vector_store %arg6[%c0_12, %c0_13, %c0_14], %23 {strides = array<i32>} : memref<2x16x128xf32, #tpu.memory_space<vmem>>, vector<2x16x128xf32>,
    %25 = vector.shape_cast %23 : vector<2x16x128xf32> to vector<32x128xf32>
    %cst_15 = arith.constant dense<0.000000e+00> : vector<128xf32>
    %26 = vector.multi_reduction <add>, %25, %cst_15 [0] : vector<32x128xf32> to vector<128xf32>
    %27 = vector.shape_cast %26 : vector<128xf32> to vector<1x128xf32>
    %28 = arith.mulf %25, %25 : vector<32x128xf32>
    %cst_16 = arith.constant dense<0.000000e+00> : vector<128xf32>
    %29 = vector.multi_reduction <add>, %28, %cst_16 [0] : vector<32x128xf32> to vector<128xf32>
    %30 = vector.shape_cast %29 : vector<128xf32> to vector<1x128xf32>
    %31 = tpu.concatenate %27, %30 in 0 : vector<1x128xf32>, vector<1x128xf32> -> vector<2x128xf32>
    %c0_17 = arith.constant 0 : index
    %c0_18 = arith.constant 0 : index
    %c0_19 = arith.constant 0 : index
    %32 = vector.load %arg7[%c0_17, %c0_18, %c0_19] : memref<1x2x128xf32, #tpu.memory_space<vmem>>, vector<1x2x128xf32>
    %33 = vector.shape_cast %32 : vector<1x2x128xf32> to vector<2x128xf32>
    %34 = vector.shape_cast %31 : vector<2x128xf32> to vector<1x2x128xf32>
    tpu.vector_store %arg7[%c0_17, %c0_18, %c0_19], %34 {strides = array<i32>} : memref<1x2x128xf32, #tpu.memory_space<vmem>>, vector<1x2x128xf32>,
    return
  }
  func.func @transform_0(%arg0: i32) -> (i32, i32, i32) {
    %c0_i32 = arith.constant 0 : i32
    %c0_i32_0 = arith.constant 0 : i32
    %c0_i32_1 = arith.constant 0 : i32
    return %arg0, %c0_i32, %c0_i32_0 : i32, i32, i32
  }
  func.func @transform_1(%arg0: i32) -> (i32, i32) {
    %c0_i32 = arith.constant 0 : i32
    %c0_i32_0 = arith.constant 0 : i32
    %c0_i32_1 = arith.constant 0 : i32
    return %c0_i32, %c0_i32_0 : i32, i32
  }
  func.func @transform_2(%arg0: i32) -> (i32, i32) {
    %c0_i32 = arith.constant 0 : i32
    %c0_i32_0 = arith.constant 0 : i32
    %c0_i32_1 = arith.constant 0 : i32
    return %c0_i32, %c0_i32_0 : i32, i32
  }
  func.func @transform_3(%arg0: i32) -> (i32, i32) {
    %c0_i32 = arith.constant 0 : i32
    %c0_i32_0 = arith.constant 0 : i32
    %c0_i32_1 = arith.constant 0 : i32
    return %c0_i32, %c0_i32_0 : i32, i32
  }
  func.func @transform_4(%arg0: i32) -> (i32, i32) {
    %c0_i32 = arith.constant 0 : i32
    %c0_i32_0 = arith.constant 0 : i32
    %c0_i32_1 = arith.constant 0 : i32
    return %c0_i32, %c0_i32_0 : i32, i32
  }
  func.func @transform_5(%arg0: i32) -> (i32, i32, i32) {
    %c0_i32 = arith.constant 0 : i32
    %c0_i32_0 = arith.constant 0 : i32
    %c0_i32_1 = arith.constant 0 : i32
    return %arg0, %c0_i32, %c0_i32_0 : i32, i32, i32
  }
  func.func @transform_6(%arg0: i32) -> (i32, i32, i32) {
    %c0_i32 = arith.constant 0 : i32
    %c0_i32_0 = arith.constant 0 : i32
    %c0_i32_1 = arith.constant 0 : i32
    return %arg0, %c0_i32, %c0_i32_0 : i32, i32, i32
  }
}

module attributes {stable_mosaic.version = 11 : i64} {
  func.func @bn_residual_relu_kernel(%arg0: i32, %arg1: memref<2x16x128xf32, #tpu.memory_space<vmem>>, %arg2: memref<2x16x128xf32, #tpu.memory_space<vmem>>, %arg3: memref<1x128xf32, #tpu.memory_space<vmem>>, %arg4: memref<1x128xf32, #tpu.memory_space<vmem>>, %arg5: memref<2x16x128xf32, #tpu.memory_space<vmem>>) attributes {dimension_semantics = [#tpu.dimension_semantics<parallel>], iteration_bounds = array<i64: 1>, scalar_prefetch = 0 : i64, scratch_operands = 0 : i64, tpu.core_type = #tpu.core_type<tc>, window_params = [{transform_indices = @transform_0, window_bounds = array<i64: 2, 16, 128>}, {transform_indices = @transform_1, window_bounds = array<i64: 2, 16, 128>}, {pipeline_mode = #tpu.pipeline_mode<synchronous>, transform_indices = @transform_2, window_bounds = array<i64: 1, 128>}, {pipeline_mode = #tpu.pipeline_mode<synchronous>, transform_indices = @transform_3, window_bounds = array<i64: 1, 128>}, {transform_indices = @transform_4, window_bounds = array<i64: 2, 16, 128>}]} {
    %c0 = arith.constant 0 : index
    %c0_0 = arith.constant 0 : index
    %c0_1 = arith.constant 0 : index
    %0 = vector.load %arg2[%c0, %c0_0, %c0_1] : memref<2x16x128xf32, #tpu.memory_space<vmem>>, vector<2x16x128xf32>
    %c0_2 = arith.constant 0 : index
    %c0_3 = arith.constant 0 : index
    %c0_4 = arith.constant 0 : index
    %1 = vector.load %arg1[%c0_2, %c0_3, %c0_4] : memref<2x16x128xf32, #tpu.memory_space<vmem>>, vector<2x16x128xf32>
    %c0_5 = arith.constant 0 : index
    %c0_6 = arith.constant 0 : index
    %2 = vector.load %arg3[%c0_5, %c0_6] : memref<1x128xf32, #tpu.memory_space<vmem>>, vector<1x128xf32>
    %3 = vector.shape_cast %2 : vector<1x128xf32> to vector<1x1x128xf32>
    %4 = vector.broadcast %3 : vector<1x1x128xf32> to vector<2x16x128xf32>
    %5 = arith.mulf %1, %4 : vector<2x16x128xf32>
    %6 = arith.addf %0, %5 : vector<2x16x128xf32>
    %c0_7 = arith.constant 0 : index
    %c0_8 = arith.constant 0 : index
    %7 = vector.load %arg4[%c0_7, %c0_8] : memref<1x128xf32, #tpu.memory_space<vmem>>, vector<1x128xf32>
    %8 = vector.shape_cast %7 : vector<1x128xf32> to vector<1x1x128xf32>
    %9 = vector.broadcast %8 : vector<1x1x128xf32> to vector<2x16x128xf32>
    %10 = arith.addf %6, %9 : vector<2x16x128xf32>
    %cst = arith.constant 0.000000e+00 : f32
    %11 = vector.broadcast %cst : f32 to vector<2x16x128xf32>
    %12 = arith.maximumf %10, %11 : vector<2x16x128xf32>
    %c0_9 = arith.constant 0 : index
    %c0_10 = arith.constant 0 : index
    %c0_11 = arith.constant 0 : index
    %13 = vector.load %arg5[%c0_9, %c0_10, %c0_11] : memref<2x16x128xf32, #tpu.memory_space<vmem>>, vector<2x16x128xf32>
    tpu.vector_store %arg5[%c0_9, %c0_10, %c0_11], %12 {strides = array<i32>} : memref<2x16x128xf32, #tpu.memory_space<vmem>>, vector<2x16x128xf32>,
    return
  }
  func.func @transform_0(%arg0: i32) -> (i32, i32, i32) {
    %c0_i32 = arith.constant 0 : i32
    %c0_i32_0 = arith.constant 0 : i32
    %c0_i32_1 = arith.constant 0 : i32
    return %arg0, %c0_i32, %c0_i32_0 : i32, i32, i32
  }
  func.func @transform_1(%arg0: i32) -> (i32, i32, i32) {
    %c0_i32 = arith.constant 0 : i32
    %c0_i32_0 = arith.constant 0 : i32
    %c0_i32_1 = arith.constant 0 : i32
    return %arg0, %c0_i32, %c0_i32_0 : i32, i32, i32
  }
  func.func @transform_2(%arg0: i32) -> (i32, i32) {
    %c0_i32 = arith.constant 0 : i32
    %c0_i32_0 = arith.constant 0 : i32
    %c0_i32_1 = arith.constant 0 : i32
    return %c0_i32, %c0_i32_0 : i32, i32
  }
  func.func @transform_3(%arg0: i32) -> (i32, i32) {
    %c0_i32 = arith.constant 0 : i32
    %c0_i32_0 = arith.constant 0 : i32
    %c0_i32_1 = arith.constant 0 : i32
    return %c0_i32, %c0_i32_0 : i32, i32
  }
  func.func @transform_4(%arg0: i32) -> (i32, i32, i32) {
    %c0_i32 = arith.constant 0 : i32
    %c0_i32_0 = arith.constant 0 : i32
    %c0_i32_1 = arith.constant 0 : i32
    return %arg0, %c0_i32, %c0_i32_0 : i32, i32, i32
  }
}

</mosaic_0001>

<bundles_post_ra>
// kernel: tile.33
= control target key start
LH: loop header
LB: loop body
LE: loop exit
PB: predicated region body
PF: predicated region fallthrough
CT: control target
= control target key end

     0   :  { %s28_s0 = inlined_call_operand.vmem [shape: f32[8], index: 0, kind: input, shape index: {}]   ;;  %s29_s1 = inlined_call_operand.vmem [shape: f32[16,8], index: 1, kind: output, shape index: {}]  }
   0x1   :  { %v4_v0 = vld [vmem:[%s28_s0] ss:$0 sm:$0xff] }
   0x2   :  { %5 = vst [vmem:[%s29_s1] sm:$0xff] %v4_v0 }
   0x3   :  { %8 = vst [vmem:[%s29_s1 + $0x8] sm:$0xff] %v4_v0 }

// kernel: tile.34
= control target key start
LH: loop header
LB: loop body
LE: loop exit
PB: predicated region body
PF: predicated region fallthrough
CT: control target
= control target key end

     0   :  { %s131_s10 = smov 120   ;;  %s132_s11 = smov 104   ;;  %vm3_vm0 = vcmask 64512   ;;  %vm9_vm1 = vcmask 1048512   ;;  %vm15_vm2 = vcmask 982912   ;;  %vm21_vm3 = vcmask 917312   ;;  %s207_s0 = inlined_call_operand.vmem [shape: f32[16,8], index: 0, kind: input, shape index: {}]   ;;  %s208_s1 = inlined_call_operand.vmem [shape: f32[1,128], index: 1, kind: output, shape index: {}]  }
   0x1   :  { %v101_v0 = vld [vmem:[%s207_s0 + $0xf] sm:$0x1]   ;;  %v103_v1 = vld [vmem:[%s207_s0 + $0xd] sm:$0x1]   ;;  %v105_v2 = vld [vmem:[%s207_s0 + $0xb] sm:$0x1]  }
   0x2   :  { %7 = vrot.lane.b32.xlu0 %v101_v0, %s131_s10  ;;  %19 = vrot.lane.b32.xlu1 %v103_v1, %s132_s11  ;;  %s133_s14 = smov 88   ;;  %v102_v3 = vld [vmem:[%s207_s0 + $0xe] sm:$0x1]   ;;  %v104_v4 = vld [vmem:[%s207_s0 + $0xc] sm:$0x1]   ;;  %s134_s19 = smov 112  }
   0x3   :  { %31 = vrot.lane.b32.xlu2 %v105_v2, %s133_s14  ;;  %s135_s20 = smov 96   ;;  %v106_v5 = vld [vmem:[%s207_s0 + $0xa] sm:$0x1]   ;;  %s136_s23 = smov 80   ;;  %v107_v6 = vld [vmem:[%s207_s0 + $0x9] sm:$0x1]  }
   0x4   :  { %v108_v7 = vld [vmem:[%s207_s0 + $0x8] sm:$0x1]   ;;  %s137_s28 = smov 72   ;;  %s138_s29 = smov 64   ;;  %v109_v8 = vld [vmem:[%s207_s0 + $0x7] sm:$0x1]  }
   0x5   :  { %s139_s3 = smov 56   ;;  %v110_v9 = vld [vmem:[%s207_s0 + $0x6] sm:$0x1]   ;;  %v111_v10 = vld [vmem:[%s207_s0 + $0x5] sm:$0x1]   ;;  %s140_s8 = smov 48  }
   0x6   :  { %s141_s9 = smov 40   ;;  %v112_v11 = vld [vmem:[%s207_s0 + $0x4] sm:$0x1]   ;;  %s142_s12 = smov 32   ;;  %v113_v12 = vld [vmem:[%s207_s0 + $0x3] sm:$0x1]  }
   0x7   :  { %v114_v13 = vld [vmem:[%s207_s0 + $0x2] sm:$0x1]   ;;  %s143_s17 = smov 24   ;;  %s144_s18 = smov 16   ;;  %v115_v14 = vld [vmem:[%s207_s0 + $0x1] sm:$0x1]  }
   0x8   :  { %s145_s21 = smov 8   ;;  %v2_v15 = vld [vmem:[%s207_s0] sm:$0x1]   ;;  %vm27_vm4 = vcmask 851712   ;;  %vm33_vm5 = vcmask 786112   ;;  %vm39_vm6 = vcmask 720512  }
   0x9   :  { %4 = vst.msk [vmem:[#allocation0] sm:$0x1] %vm3_vm0, %v2_v15   ;;  %vm45_vm7 = vcmask 654912   ;;  %vm51_vm8 = vcmask 589312   ;;  %vm57_vm9 = vcmask 523712   ;;  %vm63_vm10 = vcmask 458112  }
   0xa   :  { %13 = vrot.lane.b32.xlu0 %v102_v3, %s134_s19  ;;  %25 = vrot.lane.b32.xlu1 %v104_v4, %s135_s20  ;;  %vm69_vm11 = vcmask 392512   ;;  %vm75_vm12 = vcmask 326912   ;;  %vm81_vm13 = vcmask 261312   ;;  %vm87_vm14 = vcmask 195712  }
   0xb   :  { %37 = vrot.lane.b32.xlu2 %v106_v5, %s136_s23  ;;  %vm93_vm15 = vcmask 130112  }
  0x12   :  { %43 = vrot.lane.b32.xlu0 %v107_v6, %s137_s28  ;;  %49 = vrot.lane.b32.xlu1 %v108_v7, %s138_s29 }
  0x13   :  { %55 = vrot.lane.b32.xlu2 %v109_v8, %s139_s3 }
  0x1a   :  { %61 = vrot.lane.b32.xlu0 %v110_v9, %s140_s8  ;;  %67 = vrot.lane.b32.xlu1 %v111_v10, %s141_s9 }
  0x1b   :  { %73 = vrot.lane.b32.xlu2 %v112_v11, %s142_s12 }
  0x22   :  { %79 = vrot.lane.b32.xlu0 %v113_v12, %s143_s17  ;;  %85 = vrot.lane.b32.xlu1 %v114_v13, %s144_s18 }
  0x23   :  { %91 = vrot.lane.b32.xlu2 %v115_v14, %s145_s21 }
  0x5d   :  { %v32_v16 = vpop.permute.xlu2 %31  }
  0x65   :  { %v38_v17 = vpop.permute.xlu2 %37  }
  0x6d   :  { %v56_v18 = vpop.permute.xlu2 %55  }
  0x74   :  { %v8_v19 = vpop.permute.xlu0 %7   ;;  %v20_v20 = vpop.permute.xlu1 %19  }
  0x75   :  { %10 = vst.msk [vmem:[#allocation0] sm:$0x1] %vm9_vm1, %v8_v19   ;;  %v74_v21 = vpop.permute.xlu2 %73  }
  0x7c   :  { %v14_v22 = vpop.permute.xlu0 %13   ;;  %v26_v23 = vpop.permute.xlu1 %25  }
  0x7d   :  { %16 = vst.msk [vmem:[#allocation0] sm:$0x1] %vm15_vm2, %v14_v22   ;;  %v92_v24 = vpop.permute.xlu2 %91  }
  0x7e   :  { %22 = vst.msk [vmem:[#allocation0] sm:$0x1] %vm21_vm3, %v20_v20  }
  0x7f   :  { %28 = vst.msk [vmem:[#allocation0] sm:$0x1] %vm27_vm4, %v26_v23  }
  0x80   :  { %34 = vst.msk [vmem:[#allocation0] sm:$0x1] %vm33_vm5, %v32_v16  }
  0x81   :  { %40 = vst.msk [vmem:[#allocation0] sm:$0x1] %vm39_vm6, %v38_v17  }
  0x84   :  { %v44_v25 = vpop.permute.xlu0 %43   ;;  %v50_v26 = vpop.permute.xlu1 %49  }
  0x85   :  { %46 = vst.msk [vmem:[#allocation0] sm:$0x1] %vm45_vm7, %v44_v25  }
  0x86   :  { %52 = vst.msk [vmem:[#allocation0] sm:$0x1] %vm51_vm8, %v50_v26  }
  0x87   :  { %58 = vst.msk [vmem:[#allocation0] sm:$0x1] %vm57_vm9, %v56_v18  }
  0x8c   :  { %v62_v27 = vpop.permute.xlu0 %61   ;;  %v68_v28 = vpop.permute.xlu1 %67  }
  0x8d   :  { %64 = vst.msk [vmem:[#allocation0] sm:$0x1] %vm63_vm10, %v62_v27  }
  0x8e   :  { %70 = vst.msk [vmem:[#allocation0] sm:$0x1] %vm69_vm11, %v68_v28  }
  0x8f   :  { %76 = vst.msk [vmem:[#allocation0] sm:$0x1] %vm75_vm12, %v74_v21  }
  0x94   :  { %v80_v29 = vpop.permute.xlu0 %79   ;;  %v86_v30 = vpop.permute.xlu1 %85  }
  0x95   :  { %82 = vst.msk [vmem:[#allocation0] sm:$0x1] %vm81_vm13, %v80_v29  }
  0x96   :  { %88 = vst.msk [vmem:[#allocation0] sm:$0x1] %vm87_vm14, %v86_v30  }
  0x97   :  { %94 = vst.msk [vmem:[#allocation0] sm:$0x1] %vm93_vm15, %v92_v24  }
  0x9e   :  { %v97_v31 = vld [vmem:[#allocation0] sm:$0x1] }
  0x9f   :  { %100 = vst [vmem:[%s208_s1] sm:$0x1] %v97_v31 }

// kernel: residual_block.3
= control target key start
LH: loop header
LB: loop body
LE: loop exit
PB: predicated region body
PF: predicated region fallthrough
CT: control target
= control target key end

     0   :  { %vm24_vm0 = vcmask 1040384   ;;  %vm45_vm1 = vcmask 1045504   ;;  %vm493_vm3 = vmmov 1   ;;  %s633_s1 = inlined_call_operand.vmem [shape: bf16[384,128], index: 1, kind: input, shape index: {}]   ;;  %s634_s2 = inlined_call_operand.vmem [shape: f32[1,128], index: 2, kind: input, shape index: {}]   ;;  %s635_s0 = inlined_call_operand.vmem [shape: f32[2,16,128], index: 0, kind: input, shape index: {}]   ;;  %s636_s3 = inlined_call_operand.vmem [shape: f32[2,16,128], index: 3, kind: output, shape index: {0}]   ;;  %s637_s4 = inlined_call_operand.vmem [shape: f32[1,2,128], index: 4, kind: output, shape index: {1}]  }
   0x1   :  { %v466_v0 = vld [vmem:[%s633_s1 + $0x38] sm:$0xff]  ;;  %v465_v3 = vld [vmem:[%s633_s1 + $0x30] sm:$0xff]  ;;  %v464_v6 = vld [vmem:[%s633_s1 + $0x28] sm:$0xff] }
   0x2   :  { %v474_v1 = vld [vmem:[%s633_s1 + $0x78] sm:$0xff]  ;;  %262 = vmatpush.bf16.msra.mxu0 %v466_v0  ;;  %v473_v4 = vld [vmem:[%s633_s1 + $0x70] sm:$0xff]  ;;  %483 = vmatpush.bf16.msra.mxu3 %v466_v0  ;;  %v472_v7 = vld [vmem:[%s633_s1 + $0x68] sm:$0xff] }
   0x3   :  { %v482_v2 = vld [vmem:[%s633_s1 + $0xb8] sm:$0xff]  ;;  %281 = vmatpush.bf16.msra.mxu1 %v474_v1  ;;  %v481_v5 = vld [vmem:[%s633_s1 + $0xb0] sm:$0xff]  ;;  %v480_v8 = vld [vmem:[%s633_s1 + $0xa8] sm:$0xff] }
   0x4   :  { %300 = vmatpush.bf16.msra.mxu2 %v482_v2  ;;  %v463_v9 = vld [vmem:[%s633_s1 + $0x20] sm:$0xff]  ;;  %v17_v13 = vld [vmem:[%s635_s0 + $0x8] sm:$0xff]  ;;  %v462_v14 = vld [vmem:[%s633_s1 + $0x18] sm:$0xff] }
   0x5   :  { %v471_v10 = vld [vmem:[%s633_s1 + $0x60] sm:$0xff]  ;;  %v470_v15 = vld [vmem:[%s633_s1 + $0x58] sm:$0xff]  ;;  %v26_v18 = vrot.slane %v17_v13, 7  ;;  %v461_v19 = vld [vmem:[%s633_s1 + $0x10] sm:$0xff] }
   0x6   :  { %263 = vmatpush.bf16.msra.mxu0 %v465_v3  ;;  %484 = vmatpush.bf16.msra.mxu3 %v465_v3  ;;  %v479_v11 = vld [vmem:[%s633_s1 + $0xa0] sm:$0xff]  ;;  %v478_v16 = vld [vmem:[%s633_s1 + $0x98] sm:$0xff]  ;;  %v469_v20 = vld [vmem:[%s633_s1 + $0x50] sm:$0xff] }
   0x7   :  { %282 = vmatpush.bf16.msra.mxu1 %v473_v4  ;;  %v16_v12 = vld [vmem:[%s635_s0] sm:$0xff]  ;;  %v477_v21 = vld [vmem:[%s633_s1 + $0x90] sm:$0xff]  ;;  %v39_v25 = vsel %vm24_vm0, %v26_v18, 0.0  ;;  %v19_v26 = vld [vmem:[%s635_s0 + $0x18] sm:$0xff] }
   0x8   :  { %301 = vmatpush.bf16.msra.mxu2 %v481_v5  ;;  %v25_v17 = vrot.slane %v16_v12, 7  ;;  %v18_v22 = vld [vmem:[%s635_s0 + $0x10] sm:$0xff]  ;;  %v460_v27 = vld [vmem:[%s633_s1 + $0x8] sm:$0xff]  ;;  %v49_v33 = vrot.slane %v39_v25, 2  ;;  %v29_v34 = vrot.slane %v19_v26, 7  ;;  %v459_v35 = vld [vmem:[%s633_s1] sm:$0xff]  ;;  %v61_v42 = vpack.c.bf16 %v17_v13, %v16_v12 }
   0x9   :  { %v468_v28 = vld [vmem:[%s633_s1 + $0x48] sm:$0xff]  ;;  %v28_v29 = vrot.slane %v18_v22, 7  ;;  %v467_v36 = vld [vmem:[%s633_s1 + $0x40] sm:$0xff]  ;;  %vm451_vm2 = vmneg %vm24_vm0  ;;  %v64_v52 = vpack.c.bf16 %v19_v26, %v18_v22 }
   0xa   :  { %264 = vmatpush.bf16.msra.mxu0 %v464_v6  ;;  %485 = vmatpush.bf16.msra.mxu3 %v464_v6  ;;  %v27_v23 = vsel %vm24_vm0, %v25_v17, %v26_v18  ;;  %v37_v24 = vsel %vm24_vm0, 0.0, %v25_v17  ;;  %v476_v30 = vld [vmem:[%s633_s1 + $0x88] sm:$0xff]  ;;  %v475_v37 = vld [vmem:[%s633_s1 + $0x80] sm:$0xff]  ;;  %vm452_vm4 = vmpackc.low %vm493_vm3, %vm451_vm2  ;;  %v40_v46 = vsel %vm24_vm0, %v29_v34, 0.0 }
   0xb   :  { %283 = vmatpush.bf16.msra.mxu1 %v472_v7  ;;  %v47_v31 = vrot.slane %v27_v23, 2  ;;  %v46_v32 = vrot.slane %v37_v24, 2  ;;  %v30_v40 = vsel %vm24_vm0, %v28_v29, %v29_v34  ;;  %v453_v41 = vpack.c.bf16 %v27_v23, %v25_v17  ;;  %v492_v54 = vld [vmem:[%s634_s2] ss:$0 sm:$0xff] }
   0xc   :  { %302 = vmatpush.bf16.msra.mxu2 %v480_v8  ;;  %v457_v44 = vpack.c.bf16 %v30_v40, %v28_v29  ;;  %v38_v45 = vsel %vm24_vm0, 0.0, %v28_v29  ;;  %v52_v47 = vrot.slane %v30_v40, 2  ;;  %v54_v49 = vrot.slane %v40_v46, 2 }
   0xd   :  { %v48_v38 = vsel %vm45_vm1, %v46_v32, %v47_v31  ;;  %v50_v39 = vsel %vm45_vm1, %v47_v31, %v49_v33  ;;  %v51_v48 = vrot.slane %v38_v45, 2 }
   0xe   :  { %265 = vmatpush.bf16.msra.mxu0 %v463_v9  ;;  %486 = vmatpush.bf16.msra.mxu3 %v463_v9  ;;  %v62_v43 = vpack.c.bf16 %v50_v39, %v48_v38  ;;  %v55_v51 = vsel %vm45_vm1, %v52_v47, %v54_v49 }
   0xf   :  { %284 = vmatpush.bf16.msra.mxu1 %v471_v10  ;;  %v53_v50 = vsel %vm45_vm1, %v51_v48, %v52_v47 }
  0x10   :  { %303 = vmatpush.bf16.msra.mxu2 %v479_v11  ;;  %v65_v53 = vpack.c.bf16 %v55_v51, %v53_v50 }
  0x12   :  { %266 = vmatpush.bf16.msra.mxu0 %v462_v14  ;;  %487 = vmatpush.bf16.msra.mxu3 %v462_v14 }
  0x13   :  { %285 = vmatpush.bf16.msra.mxu1 %v470_v15 }
  0x14   :  { %304 = vmatpush.bf16.msra.mxu2 %v478_v16 }
  0x16   :  { %267 = vmatpush.bf16.msra.mxu0 %v461_v19  ;;  %488 = vmatpush.bf16.msra.mxu3 %v461_v19 }
  0x17   :  { %286 = vmatpush.bf16.msra.mxu1 %v469_v20 }
  0x18   :  { %305 = vmatpush.bf16.msra.mxu2 %v477_v21 }
  0x1a   :  { %268 = vmatpush.bf16.msra.mxu0 %v460_v27  ;;  %489 = vmatpush.bf16.msra.mxu3 %v460_v27 }
  0x1b   :  { %287 = vmatpush.bf16.msra.mxu1 %v468_v28 }
  0x1c   :  { %306 = vmatpush.bf16.msra.mxu2 %v476_v30 }
  0x1e   :  { %269 = vmatpush.bf16.msra.mxu0 %v459_v35  ;;  %490 = vmatpush.bf16.msra.mxu3 %v459_v35 }
  0x1f   :  { %288 = vmatpush.bf16.msra.mxu1 %v467_v36 }
  0x20   :  { %307 = vmatpush.bf16.msra.mxu2 %v475_v37 }
  0x21   :  { %454 = vmatmul.msk.bf16.vlgmr.msra.gmra.mxu0 %vm452_vm4, %v453_v41  ;;  %458 = vmatmul.msk.bf16.vlgmr.msra.gmra.mxu3 %vm452_vm4, %v457_v44 }
  0x22   :  { %289 = vmatmul.bf16.vlgmr.msra.gmra.mxu1 %v61_v42 }
  0x23   :  { %308 = vmatmul.bf16.vlgmr.msra.gmra.mxu2 %v62_v43 }
  0x32   :  { %294 = vmatmul.bf16.gmra.mxu1 %v64_v52 }
  0x33   :  { %313 = vmatmul.bf16.gmra.mxu2 %v65_v53 }
  0x9e   :  { %v271_v55 = vpop.f32.mrf.mxu0 }
  0x9f   :  { %v290_v56 = vpop.f32.mrf.mxu1  ;;  %v272_v57 = vadd.f32 %v492_v54, %v271_v55 }
  0xa1   :  { %v291_v58 = vadd.f32 %v290_v56, %v272_v57 }
  0xa4   :  { %v276_v1 = vpop.f32.mrf.mxu3 }
  0xa5   :  { %v277_v3 = vadd.f32 %v492_v54, %v276_v1 }
  0xa6   :  { %v309_v59 = vpop.f32.mrf.mxu2  ;;  %v273_v61 = vpop.f32.mrf.mxu0 }
  0xa7   :  { %v310_v60 = vadd.f32 %v309_v59, %v291_v58  ;;  %v292_v62 = vpop.f32.mrf.mxu1  ;;  %v274_v63 = vadd.f32 %v492_v54, %v273_v61 }
  0xa9   :  { %319 = vst [vmem:[%s636_s3] sm:$0xff] %v310_v60  ;;  %v293_v0 = vadd.f32 %v292_v62, %v274_v63  ;;  %v332_v13 = vmul.f32 %v310_v60, %v310_v60 }
  0xac   :  { %v278_v9 = vpop.f32.mrf.mxu3 }
  0xad   :  { %v279_v12 = vadd.f32 %v492_v54, %v278_v9 }
  0xae   :  { %v311_v2 = vpop.f32.mrf.mxu2 }
  0xaf   :  { %v312_v4 = vadd.f32 %v311_v2, %v293_v0  ;;  %v295_v5 = vpop.f32.mrf.mxu1 }
  0xb0   :  { %v296_v6 = vadd.f32 %v295_v5, %v277_v3 }
  0xb1   :  { %320 = vst [vmem:[%s636_s3 + $0x8] sm:$0xff] %v312_v4  ;;  %v333_v11 = vmul.f32 %v312_v4, %v312_v4  ;;  %v323_v14 = vadd.f32 %v312_v4, %v310_v60 }
  0xb3   :  { %v336_v18 = vadd.f32 %v333_v11, %v332_v13 }
  0xb6   :  { %v314_v7 = vpop.f32.mrf.mxu2 }
  0xb7   :  { %v315_v8 = vadd.f32 %v314_v7, %v296_v6  ;;  %v297_v10 = vpop.f32.mrf.mxu1 }
  0xb8   :  { %v298_v16 = vadd.f32 %v297_v10, %v279_v12 }
  0xb9   :  { %321 = vst [vmem:[%s636_s3 + $0x10] sm:$0xff] %v315_v8  ;;  %v334_v15 = vmul.f32 %v315_v8, %v315_v8  ;;  %v324_v19 = vadd.f32 %v323_v14, %v315_v8 }
  0xbb   :  { %v337_v21 = vadd.f32 %v336_v18, %v334_v15 }
  0xbe   :  { %v316_v17 = vpop.f32.mrf.mxu2 }
  0xbf   :  { %v317_v20 = vadd.f32 %v316_v17, %v298_v16 }
  0xc1   :  { %322 = vst [vmem:[%s636_s3 + $0x18] sm:$0xff] %v317_v20  ;;  %v325_v22 = vadd.f32 %v324_v19, %v317_v20  ;;  %v335_v23 = vmul.f32 %v317_v20, %v317_v20 }
  0xc3   :  { %v326_v24 = vrot.slane %v325_v22, 4  ;;  %v338_v25 = vadd.f32 %v337_v21, %v335_v23 }
  0xc5   :  { %v327_v26 = vadd.f32 %v326_v24, %v325_v22  ;;  %v339_v27 = vrot.slane %v338_v25, 4 }
  0xc7   :  { %v328_v28 = vrot.slane %v327_v26, 2  ;;  %v340_v29 = vadd.f32 %v339_v27, %v338_v25 }
  0xc9   :  { %v329_v30 = vadd.f32 %v328_v28, %v327_v26  ;;  %v341_v31 = vrot.slane %v340_v29, 2 }
  0xcb   :  { %v330_v32 = vrot.slane %v329_v30, 1  ;;  %v342_v33 = vadd.f32 %v341_v31, %v340_v29 }
  0xcd   :  { %v343_v34 = vrot.slane %v342_v33, 1  ;;  %v331_v35 = vadd.f32 %v330_v32, %v329_v30 }
  0xcf   :  { %v344_v36 = vadd.f32 %v343_v34, %v342_v33 }
  0xd1   :  { %v345_v37 = vsel %vm24_vm0, %v331_v35, %v344_v36 }
  0xd2   :  { %346 = vst [vmem:[%s637_s4] sm:$0x3] %v345_v37 }

// kernel: residual_block.5
= control target key start
LH: loop header
LB: loop body
LE: loop exit
PB: predicated region body
PF: predicated region fallthrough
CT: control target
= control target key end

     0   :  { %s126_s0 = inlined_call_operand.vmem [shape: f32[2,16,128], index: 0, kind: input, shape index: {}, may-alias: {0,4}]   ;;  %s127_s1 = inlined_call_operand.vmem [shape: f32[2,16,128], index: 1, kind: input, shape index: {}]   ;;  %s128_s2 = inlined_call_operand.vmem [shape: f32[1,128], index: 2, kind: input, shape index: {}]   ;;  %s129_s3 = inlined_call_operand.vmem [shape: f32[1,128], index: 3, kind: input, shape index: {}]   ;;  %s130_s4 = inlined_call_operand.vmem [shape: f32[2,16,128], index: 4, kind: output, shape index: {}, may-alias: {0,4}]  }
   0x1   :  { %v17_v0 = vld [vmem:[%s127_s1] sm:$0xff]  ;;  %v18_v4 = vld [vmem:[%s127_s1 + $0x8] sm:$0xff]  ;;  %v19_v6 = vld [vmem:[%s127_s1 + $0x10] sm:$0xff] }
   0x2   :  { %v21_v1 = vld [vmem:[%s126_s0] sm:$0xff]  ;;  %v22_v5 = vld [vmem:[%s126_s0 + $0x8] sm:$0xff]  ;;  %v23_v9 = vld [vmem:[%s126_s0 + $0x10] sm:$0xff] }
   0x3   :  { %v57_v2 = vld [vmem:[%s128_s2] ss:$0 sm:$0xff]  ;;  %v20_v10 = vld [vmem:[%s127_s1 + $0x18] sm:$0xff] }
   0x4   :  { %v58_v3 = vld [vmem:[%s129_s3] ss:$0 sm:$0xff]  ;;  %v29_v7 = vmul.f32 %v57_v2, %v21_v1  ;;  %v30_v8 = vmul.f32 %v57_v2, %v22_v5  ;;  %v24_v11 = vld [vmem:[%s126_s0 + $0x18] sm:$0xff]  ;;  %v31_v12 = vmul.f32 %v57_v2, %v23_v9 }
   0x5   :  { %v32_v13 = vmul.f32 %v57_v2, %v24_v11 }
   0x6   :  { %v33_v14 = vadd.f32 %v29_v7, %v17_v0  ;;  %v34_v15 = vadd.f32 %v30_v8, %v18_v4  ;;  %v35_v16 = vadd.f32 %v31_v12, %v19_v6 }
   0x7   :  { %v36_v17 = vadd.f32 %v32_v13, %v20_v10 }
   0x8   :  { %v41_v18 = vadd.f32 %v58_v3, %v33_v14  ;;  %v42_v19 = vadd.f32 %v58_v3, %v34_v15  ;;  %v43_v20 = vadd.f32 %v58_v3, %v35_v16 }
   0x9   :  { %v44_v21 = vadd.f32 %v58_v3, %v36_v17 }
   0xa   :  { %v45_v22 = vmax.f32 %v41_v18, 0.0  ;;  %v46_v23 = vmax.f32 %v42_v19, 0.0  ;;  %v47_v24 = vmax.f32 %v43_v20, 0.0 }
   0xb   :  { %v48_v25 = vmax.f32 %v44_v21, 0.0 }
   0xc   :  { %49 = vst [vmem:[%s130_s4] sm:$0xff] %v45_v22 }
   0xd   :  { %50 = vst [vmem:[%s130_s4 + $0x8] sm:$0xff] %v46_v23 }
   0xe   :  { %51 = vst [vmem:[%s130_s4 + $0x10] sm:$0xff] %v47_v24 }
   0xf   :  { %52 = vst [vmem:[%s130_s4 + $0x18] sm:$0xff] %v48_v25 }

// kernel: residual_block.4
= control target key start
LH: loop header
LB: loop body
LE: loop exit
PB: predicated region body
PF: predicated region fallthrough
CT: control target
= control target key end

     0   :  { %vm50_vm0 = vcmask 1040384   ;;  %vm71_vm1 = vcmask 1045504   ;;  %vm521_vm3 = vmmov 1   ;;  %s680_s3 = inlined_call_operand.vmem [shape: bf16[384,128], index: 3, kind: input, shape index: {}]   ;;  %s681_s0 = inlined_call_operand.vmem [shape: f32[2,16,128], index: 0, kind: input, shape index: {}]   ;;  %s682_s1 = inlined_call_operand.vmem [shape: f32[1,128], index: 1, kind: input, shape index: {}]   ;;  %s683_s2 = inlined_call_operand.vmem [shape: f32[1,128], index: 2, kind: input, shape index: {}]   ;;  %s684_s4 = inlined_call_operand.vmem [shape: f32[1,128], index: 4, kind: input, shape index: {}]   ;;  %s685_s5 = inlined_call_operand.vmem [shape: f32[2,16,128], index: 5, kind: output, shape index: {0}]   ;;  %s686_s6 = inlined_call_operand.vmem [shape: f32[1,2,128], index: 6, kind: output, shape index: {1}]  }
   0x1   :  { %v492_v0 = vld [vmem:[%s680_s3 + $0x38] sm:$0xff]  ;;  %v491_v3 = vld [vmem:[%s680_s3 + $0x30] sm:$0xff]  ;;  %v490_v6 = vld [vmem:[%s680_s3 + $0x28] sm:$0xff] }
   0x2   :  { %v500_v1 = vld [vmem:[%s680_s3 + $0x78] sm:$0xff]  ;;  %288 = vmatpush.bf16.msra.mxu0 %v492_v0  ;;  %v499_v4 = vld [vmem:[%s680_s3 + $0x70] sm:$0xff]  ;;  %509 = vmatpush.bf16.msra.mxu3 %v492_v0  ;;  %v498_v7 = vld [vmem:[%s680_s3 + $0x68] sm:$0xff] }
   0x3   :  { %v508_v2 = vld [vmem:[%s680_s3 + $0xb8] sm:$0xff]  ;;  %307 = vmatpush.bf16.msra.mxu1 %v500_v1  ;;  %v507_v5 = vld [vmem:[%s680_s3 + $0xb0] sm:$0xff]  ;;  %v506_v8 = vld [vmem:[%s680_s3 + $0xa8] sm:$0xff] }
   0x4   :  { %326 = vmatpush.bf16.msra.mxu2 %v508_v2  ;;  %v489_v9 = vld [vmem:[%s680_s3 + $0x20] sm:$0xff]  ;;  %v23_v11 = vld [vmem:[%s681_s0 + $0x8] sm:$0xff]  ;;  %v24_v15 = vld [vmem:[%s681_s0 + $0x10] sm:$0xff] }
   0x5   :  { %v22_v10 = vld [vmem:[%s681_s0] sm:$0xff]  ;;  %v25_v16 = vld [vmem:[%s681_s0 + $0x18] sm:$0xff]  ;;  %v487_v33 = vld [vmem:[%s680_s3 + $0x10] sm:$0xff] }
   0x6   :  { %289 = vmatpush.bf16.msra.mxu0 %v491_v3  ;;  %510 = vmatpush.bf16.msra.mxu3 %v491_v3  ;;  %v518_v12 = vld [vmem:[%s682_s1] ss:$0 sm:$0xff]  ;;  %v488_v24 = vld [vmem:[%s680_s3 + $0x18] sm:$0xff]  ;;  %v495_v34 = vld [vmem:[%s680_s3 + $0x50] sm:$0xff] }
   0x7   :  { %308 = vmatpush.bf16.msra.mxu1 %v499_v4  ;;  %v519_v13 = vld [vmem:[%s683_s2] ss:$0 sm:$0xff]  ;;  %v30_v18 = vmul.f32 %v518_v12, %v22_v10  ;;  %v31_v19 = vmul.f32 %v518_v12, %v23_v11  ;;  %v32_v20 = vmul.f32 %v518_v12, %v24_v15  ;;  %v33_v21 = vmul.f32 %v518_v12, %v25_v16  ;;  %v496_v25 = vld [vmem:[%s680_s3 + $0x58] sm:$0xff]  ;;  %v503_v36 = vld [vmem:[%s680_s3 + $0x90] sm:$0xff] }
   0x8   :  { %327 = vmatpush.bf16.msra.mxu2 %v507_v5  ;;  %v497_v14 = vld [vmem:[%s680_s3 + $0x60] sm:$0xff]  ;;  %v504_v27 = vld [vmem:[%s680_s3 + $0x98] sm:$0xff]  ;;  %v486_v41 = vld [vmem:[%s680_s3 + $0x8] sm:$0xff] }
   0x9   :  { %v505_v17 = vld [vmem:[%s680_s3 + $0xa0] sm:$0xff]  ;;  %v38_v22 = vadd.f32 %v519_v13, %v30_v18  ;;  %v39_v23 = vadd.f32 %v519_v13, %v31_v19  ;;  %v617_v26 = vadd.f32 %v519_v13, %v32_v20  ;;  %v41_v30 = vadd.f32 %v519_v13, %v33_v21  ;;  %v494_v42 = vld [vmem:[%s680_s3 + $0x48] sm:$0xff]  ;;  %vm477_vm2 = vmneg %vm50_vm0 }
   0xa   :  { %290 = vmatpush.bf16.msra.mxu0 %v490_v6  ;;  %511 = vmatpush.bf16.msra.mxu3 %v490_v6  ;;  %v502_v44 = vld [vmem:[%s680_s3 + $0x88] sm:$0xff]  ;;  %v485_v49 = vld [vmem:[%s680_s3] sm:$0xff]  ;;  %vm478_vm4 = vmpackc.low %vm521_vm3, %vm477_vm2 }
   0xb   :  { %309 = vmatpush.bf16.msra.mxu1 %v498_v7  ;;  %v42_v28 = vmax.f32 %v38_v22, 0.0  ;;  %v43_v29 = vmax.f32 %v39_v23, 0.0  ;;  %v44_v35 = vmax.f32 %v617_v26, 0.0  ;;  %v45_v37 = vmax.f32 %v41_v30, 0.0  ;;  %v493_v50 = vld [vmem:[%s680_s3 + $0x40] sm:$0xff] }
   0xc   :  { %328 = vmatpush.bf16.msra.mxu2 %v506_v8  ;;  %v501_v51 = vld [vmem:[%s680_s3 + $0x80] sm:$0xff] }
   0xd   :  { %v51_v31 = vrot.slane %v42_v28, 7  ;;  %v52_v32 = vrot.slane %v43_v29, 7  ;;  %v54_v43 = vrot.slane %v44_v35, 7  ;;  %v55_v48 = vrot.slane %v45_v37, 7  ;;  %v520_v4 = vld [vmem:[%s684_s4] ss:$0 sm:$0xff] }
   0xe   :  { %291 = vmatpush.bf16.msra.mxu0 %v489_v9  ;;  %512 = vmatpush.bf16.msra.mxu3 %v489_v9  ;;  %v87_v56 = vpack.c.bf16 %v43_v29, %v42_v28  ;;  %v90_v2 = vpack.c.bf16 %v45_v37, %v44_v35 }
   0xf   :  { %310 = vmatpush.bf16.msra.mxu1 %v497_v14  ;;  %v53_v38 = vsel %vm50_vm0, %v51_v31, %v52_v32  ;;  %v63_v39 = vsel %vm50_vm0, 0.0, %v51_v31  ;;  %v65_v40 = vsel %vm50_vm0, %v52_v32, 0.0  ;;  %v56_v54 = vsel %vm50_vm0, %v54_v43, %v55_v48 }
  0x10   :  { %329 = vmatpush.bf16.msra.mxu2 %v505_v17  ;;  %v73_v45 = vrot.slane %v53_v38, 2  ;;  %v72_v46 = vrot.slane %v63_v39, 2  ;;  %v75_v47 = vrot.slane %v65_v40, 2  ;;  %v479_v55 = vpack.c.bf16 %v53_v38, %v51_v31 }
  0x11   :  { %v483_v58 = vpack.c.bf16 %v56_v54, %v54_v43  ;;  %v64_v59 = vsel %vm50_vm0, 0.0, %v54_v43  ;;  %v66_v60 = vsel %vm50_vm0, %v55_v48, 0.0  ;;  %v78_v61 = vrot.slane %v56_v54, 2 }
  0x12   :  { %292 = vmatpush.bf16.msra.mxu0 %v488_v24  ;;  %513 = vmatpush.bf16.msra.mxu3 %v488_v24  ;;  %v74_v52 = vsel %vm71_vm1, %v72_v46, %v73_v45  ;;  %v76_v53 = vsel %vm71_vm1, %v73_v45, %v75_v47  ;;  %v77_v62 = vrot.slane %v64_v59, 2  ;;  %v80_v63 = vrot.slane %v66_v60, 2 }
  0x13   :  { %311 = vmatpush.bf16.msra.mxu1 %v496_v25  ;;  %v88_v57 = vpack.c.bf16 %v76_v53, %v74_v52 }
  0x14   :  { %330 = vmatpush.bf16.msra.mxu2 %v504_v27  ;;  %v79_v0 = vsel %vm71_vm1, %v77_v62, %v78_v61  ;;  %v81_v1 = vsel %vm71_vm1, %v78_v61, %v80_v63 }
  0x15   :  { %v91_v3 = vpack.c.bf16 %v81_v1, %v79_v0 }
  0x16   :  { %293 = vmatpush.bf16.msra.mxu0 %v487_v33  ;;  %514 = vmatpush.bf16.msra.mxu3 %v487_v33 }
  0x17   :  { %312 = vmatpush.bf16.msra.mxu1 %v495_v34 }
  0x18   :  { %331 = vmatpush.bf16.msra.mxu2 %v503_v36 }
  0x1a   :  { %294 = vmatpush.bf16.msra.mxu0 %v486_v41  ;;  %515 = vmatpush.bf16.msra.mxu3 %v486_v41 }
  0x1b   :  { %313 = vmatpush.bf16.msra.mxu1 %v494_v42 }
  0x1c   :  { %332 = vmatpush.bf16.msra.mxu2 %v502_v44 }
  0x1e   :  { %295 = vmatpush.bf16.msra.mxu0 %v485_v49  ;;  %516 = vmatpush.bf16.msra.mxu3 %v485_v49 }
  0x1f   :  { %314 = vmatpush.bf16.msra.mxu1 %v493_v50 }
  0x20   :  { %333 = vmatpush.bf16.msra.mxu2 %v501_v51 }
  0x21   :  { %480 = vmatmul.msk.bf16.vlgmr.msra.gmra.mxu0 %vm478_vm4, %v479_v55  ;;  %484 = vmatmul.msk.bf16.vlgmr.msra.gmra.mxu3 %vm478_vm4, %v483_v58 }
  0x22   :  { %315 = vmatmul.bf16.vlgmr.msra.gmra.mxu1 %v87_v56 }
  0x23   :  { %334 = vmatmul.bf16.vlgmr.msra.gmra.mxu2 %v88_v57 }
  0x32   :  { %320 = vmatmul.bf16.gmra.mxu1 %v90_v2 }
  0x33   :  { %339 = vmatmul.bf16.gmra.mxu2 %v91_v3 }
  0x9e   :  { %v297_v5 = vpop.f32.mrf.mxu0 }
  0x9f   :  { %v316_v6 = vpop.f32.mrf.mxu1  ;;  %v298_v7 = vadd.f32 %v520_v4, %v297_v5 }
  0xa1   :  { %v317_v8 = vadd.f32 %v316_v6, %v298_v7 }
  0xa4   :  { %v302_v15 = vpop.f32.mrf.mxu3 }
  0xa5   :  { %v303_v17 = vadd.f32 %v520_v4, %v302_v15 }
  0xa6   :  { %v335_v9 = vpop.f32.mrf.mxu2  ;;  %v299_v11 = vpop.f32.mrf.mxu0 }
  0xa7   :  { %v336_v10 = vadd.f32 %v335_v9, %v317_v8  ;;  %v318_v12 = vpop.f32.mrf.mxu1  ;;  %v300_v13 = vadd.f32 %v520_v4, %v299_v11 }
  0xa9   :  { %345 = vst [vmem:[%s685_s5] sm:$0xff] %v336_v10  ;;  %v319_v14 = vadd.f32 %v318_v12, %v300_v13  ;;  %v358_v27 = vmul.f32 %v336_v10, %v336_v10 }
  0xac   :  { %v304_v23 = vpop.f32.mrf.mxu3 }
  0xad   :  { %v305_v26 = vadd.f32 %v520_v4, %v304_v23 }
  0xae   :  { %v337_v16 = vpop.f32.mrf.mxu2 }
  0xaf   :  { %v338_v18 = vadd.f32 %v337_v16, %v319_v14  ;;  %v321_v19 = vpop.f32.mrf.mxu1 }
  0xb0   :  { %v322_v20 = vadd.f32 %v321_v19, %v303_v17 }
  0xb1   :  { %346 = vst [vmem:[%s685_s5 + $0x8] sm:$0xff] %v338_v18  ;;  %v359_v25 = vmul.f32 %v338_v18, %v338_v18  ;;  %v349_v28 = vadd.f32 %v338_v18, %v336_v10 }
  0xb3   :  { %v362_v32 = vadd.f32 %v359_v25, %v358_v27 }
  0xb6   :  { %v340_v21 = vpop.f32.mrf.mxu2 }
  0xb7   :  { %v341_v22 = vadd.f32 %v340_v21, %v322_v20  ;;  %v323_v24 = vpop.f32.mrf.mxu1 }
  0xb8   :  { %v324_v30 = vadd.f32 %v323_v24, %v305_v26 }
  0xb9   :  { %347 = vst [vmem:[%s685_s5 + $0x10] sm:$0xff] %v341_v22  ;;  %v360_v29 = vmul.f32 %v341_v22, %v341_v22  ;;  %v350_v33 = vadd.f32 %v349_v28, %v341_v22 }
  0xbb   :  { %v363_v35 = vadd.f32 %v362_v32, %v360_v29 }
  0xbe   :  { %v342_v31 = vpop.f32.mrf.mxu2 }
  0xbf   :  { %v343_v34 = vadd.f32 %v342_v31, %v324_v30 }
  0xc1   :  { %348 = vst [vmem:[%s685_s5 + $0x18] sm:$0xff] %v343_v34  ;;  %v351_v36 = vadd.f32 %v350_v33, %v343_v34  ;;  %v361_v37 = vmul.f32 %v343_v34, %v343_v34 }
  0xc3   :  { %v352_v38 = vrot.slane %v351_v36, 4  ;;  %v364_v39 = vadd.f32 %v363_v35, %v361_v37 }
  0xc5   :  { %v353_v40 = vadd.f32 %v352_v38, %v351_v36  ;;  %v365_v41 = vrot.slane %v364_v39, 4 }
  0xc7   :  { %v354_v42 = vrot.slane %v353_v40, 2  ;;  %v366_v43 = vadd.f32 %v365_v41, %v364_v39 }
  0xc9   :  { %v355_v44 = vadd.f32 %v354_v42, %v353_v40  ;;  %v367_v45 = vrot.slane %v366_v43, 2 }
  0xcb   :  { %v356_v46 = vrot.slane %v355_v44, 1  ;;  %v368_v47 = vadd.f32 %v367_v45, %v366_v43 }
  0xcd   :  { %v369_v48 = vrot.slane %v368_v47, 1  ;;  %v357_v49 = vadd.f32 %v356_v46, %v355_v44 }
  0xcf   :  { %v370_v50 = vadd.f32 %v369_v48, %v368_v47 }
  0xd1   :  { %v371_v51 = vsel %vm50_vm0, %v357_v49, %v370_v50 }
  0xd2   :  { %372 = vst [vmem:[%s686_s6] sm:$0x3] %v371_v51 }

</bundles_post_ra>
